<compile_context>
chip_gen: v5e
topology: v5e:2x2
jax: 0.10.0
libtpu: 0.0.40
codegen_flags: <defaults>
</compile_context>

<pallas_src>
import jax
import jax.numpy as jnp
from jax.experimental import pallas as pl
from jax.experimental.pallas import tpu as pltpu


_VMEM_BUDGET = 10 * 1024 * 1024      # double-buffered working-set budget (all gens)
_TARGET_STEP_OUT = 1 * 1024 * 1024   # aim for >= ~1 MiB of output per grid step


def _group_all_concat_kernel(xyz_t_ref, feat_ref, out_ref):
    # xyz_t_ref: (BB, 3, TN)   feat_ref: (BB, C, TN)   out_ref: (BB, C+3, TN)
    # TODO(synk): the feature store starts at sublane offset 3 (inherent to the
    # concat layout); on v7x (3.2 TB/s HBM) check the bundle for masked-store /
    # rotate pressure and switch to an XLU-staged roll if it becomes vst-bound.
    out_ref[:, 0:3, :] = xyz_t_ref[...]
    out_ref[:, 3:, :] = feat_ref[...]


def _plan_blocks(B, N, C, itemsize, tile_n):
    """Choose (batch_block, lane_tile, n_batch_blocks, n_lane_blocks)."""
    # Per batch row, per lane column bytes touched in VMEM: xyz(3) + feat(C) + out(C+3).
    bytes_per_col = (2 * C + 6) * itemsize
    # Largest lane tile (128-multiple) whose double-buffered working set fits the budget.
    max_cols = (_VMEM_BUDGET // (2 * bytes_per_col)) // 128 * 128
    max_cols = max(128, max_cols)

    if tile_n is not None:
        # Validate/round user tile: must be a 128-multiple or the full extent.
        tn = N if tile_n >= N else max(128, (tile_n // 128) * 128)
    elif N <= max_cols:
        tn = N                      # single full-extent lane block (always legal)
    else:
        tn = max_cols               # 128-multiple; ragged last block masked by Pallas
    nb_n = -(-N // tn)

    # Batch blocking: only pays off when a single lane block covers N.
    bb = 1
    if nb_n == 1:
        while (bb < B
               and 2 * (bb + 1) * bytes_per_col * tn <= _VMEM_BUDGET
               and bb * (C + 3) * tn * itemsize < _TARGET_STEP_OUT):
            bb += 1
        if B >= 2:
            # Keep >= 2 grid steps so v7x's two TensorCores both get work.
            bb = min(bb, max(1, B // 2))
    nb_b = -(-B // bb)
    return bb, tn, nb_b, nb_n


def group_all(xyz, new_xyz=None, features=None, use_xyz=True, tile_n=None, xyz_t=None):
    """Pallas implementation of GroupAll.forward. `new_xyz` is ignored.

    xyz_t: optional pre-transposed coordinates (B, 3, N); when given the wrapper
    skips its own XLA transpose (saves a full (B,3,N) HBM pass, which matters
    for small C).
    """
    if xyz_t is not None:
        B, _, N = xyz_t.shape
    else:
        B, N, _ = xyz.shape

    if features is None:
        # Trivial path: tiny (B,N,3)->(B,3,N) transpose; a kernel only adds
        # launch overhead + an extra HBM round trip.
        gx = xyz_t if xyz_t is not None else jnp.transpose(xyz, (0, 2, 1))
        return gx[:, :, None, :]

    C = features.shape[1]
    if not use_xyz:
        # Pure metadata reshape, zero data movement.
        return features[:, :, None, :]

    # Concat path: the only one worth a kernel.
    if xyz_t is None:
        # TODO(synk): for small C this extra (B,3,N) HBM pass is 15-50% of total
        # traffic; callers holding (B,3,N) coords should pass xyz_t directly.
        xyz_t = jnp.transpose(xyz, (0, 2, 1))
    xyz_t = xyz_t.astype(features.dtype)

    itemsize = jnp.dtype(features.dtype).itemsize
    out_c = C + 3
    bb, tn, nb_b, nb_n = _plan_blocks(B, N, C, itemsize, tile_n)

    out = pl.pallas_call(
        _group_all_concat_kernel,
        out_shape=jax.ShapeDtypeStruct((B, out_c, N), features.dtype),
        grid_spec=pltpu.PrefetchScalarGridSpec(
            num_scalar_prefetch=0,
            grid=(nb_b, nb_n),
            in_specs=[
                pl.BlockSpec((bb, 3, tn), lambda b, n: (b, 0, n)),
                pl.BlockSpec((bb, C, tn), lambda b, n: (b, 0, n)),
            ],
            out_specs=pl.BlockSpec((bb, out_c, tn), lambda b, n: (b, 0, n)),
        ),
        compiler_params=pltpu.CompilerParams(
            dimension_semantics=("parallel", "parallel"),
        ),
        cost_estimate=pl.CostEstimate(
            flops=0,
            transcendentals=0,
            bytes_accessed=int((2 * C + 6) * B * N * itemsize),
        ),
    )(xyz_t, features)

    # (B, C+3, N) -> (B, C+3, 1, N)   (unsqueeze(2) in PyTorch terms)
    return out[:, :, None, :]


def _reference(xyz, features=None, use_xyz=True):
    grouped_xyz = jnp.transpose(xyz, (0, 2, 1))[:, :, None, :]
    if features is not None:
        grouped_features = features[:, :, None, :]
        if use_xyz:
            return jnp.concatenate([grouped_xyz, grouped_features], axis=1)
        return grouped_features
    return grouped_xyz


if __name__ == "__main__":
    key = jax.random.PRNGKey(0)
    k1, k2, k3 = jax.random.split(key, 3)

    # Small shapes consistent with the module.
    B, N, C = 2, 16, 4
    xyz = jax.random.normal(k1, (B, N, 3), dtype=jnp.float32)
    new_xyz = jax.random.normal(k2, (B, 1, 3), dtype=jnp.float32)  # ignored
    features = jax.random.normal(k3, (B, C, N), dtype=jnp.float32)

    # 1) Main concat path (Pallas kernel).
    out = jax.block_until_ready(group_all(xyz, new_xyz, features, use_xyz=True))
    ref = _reference(xyz, features, use_xyz=True)
    assert out.shape == (B, C + 3, 1, N), out.shape
    assert jnp.allclose(out, ref, atol=1e-6), "concat path mismatch vs reference"

    # 2) use_xyz=False path (no kernel: metadata reshape only).
    out_nf = jax.block_until_ready(group_all(xyz, new_xyz, features, use_xyz=False))
    assert jnp.allclose(out_nf, _reference(xyz, features, use_xyz=False), atol=1e-6)

    # 3) features=None path (no kernel: tiny XLA transpose).
    out_xyz = jax.block_until_ready(group_all(xyz, new_xyz, None))
    assert jnp.allclose(out_xyz, _reference(xyz, None), atol=1e-6)

    # 4) Caller-supplied pre-transposed xyz (skips the wrapper transpose pass).
    out_pt = jax.block_until_ready(
        group_all(None, new_xyz, features, use_xyz=True,
                  xyz_t=jnp.transpose(xyz, (0, 2, 1))))
    assert jnp.allclose(out_pt, ref, atol=1e-6), "xyz_t path mismatch"

    # 5) Multi-lane-block grid (N multiple of 128, explicit tile_n).
    N2, C2 = 256, 8
    xyz2 = jax.random.normal(k1, (B, N2, 3), dtype=jnp.float32)
    feat2 = jax.random.normal(k3, (B, C2, N2), dtype=jnp.float32)
    out2 = jax.block_until_ready(group_all(xyz2, None, feat2, use_xyz=True, tile_n=128))
    assert out2.shape == (B, C2 + 3, 1, N2), out2.shape
    assert jnp.allclose(out2, _reference(xyz2, feat2, use_xyz=True), atol=1e-6)

    # 6) Batch blocking with ragged final batch block (B=5 -> BB=2, 3 batch blocks).
    B3, N3, C3 = 5, 128, 4
    xyz3 = jax.random.normal(k1, (B3, N3, 3), dtype=jnp.float32)
    feat3 = jax.random.normal(k3, (B3, C3, N3), dtype=jnp.float32)
    out3 = jax.block_until_ready(group_all(xyz3, None, feat3, use_xyz=True))
    assert out3.shape == (B3, C3 + 3, 1, N3), out3.shape
    assert jnp.allclose(out3, _reference(xyz3, feat3, use_xyz=True), atol=1e-6)

    # 7) N not a multiple of 128 with a 128-lane tile -> masked ragged last block.
    N4, C4 = 160, 4
    xyz4 = jax.random.normal(k1, (B, N4, 3), dtype=jnp.float32)
    feat4 = jax.random.normal(k3, (B, C4, N4), dtype=jnp.float32)
    out4 = jax.block_until_ready(group_all(xyz4, None, feat4, use_xyz=True, tile_n=128))
    assert out4.shape == (B, C4 + 3, 1, N4), out4.shape
    assert jnp.allclose(out4, _reference(xyz4, feat4, use_xyz=True), atol=1e-6)

    print("KERNEL_OK")
</pallas_src>

<mosaic_0001>
module attributes {stable_mosaic.version = 11 : i64} {
  func.func @_group_all_concat_kernel(%arg0: i32, %arg1: i32, %arg2: memref<1x3x16xf32, #tpu.memory_space<vmem>>, %arg3: memref<1x4x16xf32, #tpu.memory_space<vmem>>, %arg4: memref<1x7x16xf32, #tpu.memory_space<vmem>>) attributes {dimension_semantics = [#tpu.dimension_semantics<parallel>, #tpu.dimension_semantics<parallel>], iteration_bounds = array<i64: 2, 1>, scalar_prefetch = 0 : i64, scratch_operands = 0 : i64, tpu.core_type = #tpu.core_type<tc>, window_params = [{transform_indices = @transform_0, window_bounds = array<i64: 1, 3, 16>}, {transform_indices = @transform_1, window_bounds = array<i64: 1, 4, 16>}, {transform_indices = @transform_2, window_bounds = array<i64: 1, 7, 16>}]} {
    %c0 = arith.constant 0 : index
    %c0_0 = arith.constant 0 : index
    %c0_1 = arith.constant 0 : index
    %0 = vector.load %arg2[%c0, %c0_0, %c0_1] : memref<1x3x16xf32, #tpu.memory_space<vmem>>, vector<1x3x16xf32>
    %c0_2 = arith.constant 0 : index
    %c0_3 = arith.constant 0 : index
    %c0_4 = arith.constant 0 : index
    %1 = vector.load %arg4[%c0_2, %c0_3, %c0_4] : memref<1x7x16xf32, #tpu.memory_space<vmem>>, vector<1x3x16xf32>
    tpu.vector_store %arg4[%c0_2, %c0_3, %c0_4], %0 {strides = array<i32>} : memref<1x7x16xf32, #tpu.memory_space<vmem>>, vector<1x3x16xf32>,
    %c0_5 = arith.constant 0 : index
    %c0_6 = arith.constant 0 : index
    %c0_7 = arith.constant 0 : index
    %2 = vector.load %arg3[%c0_5, %c0_6, %c0_7] : memref<1x4x16xf32, #tpu.memory_space<vmem>>, vector<1x4x16xf32>
    %c0_8 = arith.constant 0 : index
    %c3 = arith.constant 3 : index
    %c0_9 = arith.constant 0 : index
    %3 = vector.load %arg4[%c0_8, %c3, %c0_9] : memref<1x7x16xf32, #tpu.memory_space<vmem>>, vector<1x4x16xf32>
    tpu.vector_store %arg4[%c0_8, %c3, %c0_9], %2 {strides = array<i32>} : memref<1x7x16xf32, #tpu.memory_space<vmem>>, vector<1x4x16xf32>,
    return
  }
  func.func @transform_0(%arg0: i32, %arg1: i32) -> (i32, i32, i32) {
    %c0_i32 = arith.constant 0 : i32
    %c0_i32_0 = arith.constant 0 : i32
    return %arg0, %c0_i32, %arg1 : i32, i32, i32
  }
  func.func @transform_1(%arg0: i32, %arg1: i32) -> (i32, i32, i32) {
    %c0_i32 = arith.constant 0 : i32
    %c0_i32_0 = arith.constant 0 : i32
    return %arg0, %c0_i32, %arg1 : i32, i32, i32
  }
  func.func @transform_2(%arg0: i32, %arg1: i32) -> (i32, i32, i32) {
    %c0_i32 = arith.constant 0 : i32
    %c0_i32_0 = arith.constant 0 : i32
    return %arg0, %c0_i32, %arg1 : i32, i32, i32
  }
}

</mosaic_0001>

<bundles_post_ra>
// kernel: tpu_custom_call.1
= control target key start
LH: loop header
LB: loop body
LE: loop exit
PB: predicated region body
PF: predicated region fallthrough
CT: control target
= control target key end

     0   :  { %s366_s9 = smov 0   ;;  %s368_s10 = smov 0   ;;  %s390_s0 = inlined_call_operand.vmem [shape: f32[2,3,16], index: 0, kind: input, shape index: {}]   ;;  %s391_s1 = inlined_call_operand.vmem [shape: f32[2,4,16], index: 1, kind: input, shape index: {}]   ;;  %s392_s2 = inlined_call_operand.vmem [shape: f32[2,7,16], index: 2, kind: output, shape index: {}]  }
   0x1   :  { %s370_s11 = smov 0  }
   0x2 LB: > { %s24_s12 = sadd.s32 1, %s345_s10  ;;  %p297_p0 = scmp.ge.s32.totalorder %s349_s11, 1  ;;  %s349_s11 = sphi %s370_s11, %s12_s11   ;;  %s345_s10 = sphi %s368_s10, %s394_s10   ;;  %s341_s9 = sphi %s366_s9, %s393_s9  }
   0x3   : > { %p26_p1 = scmp.ge.s32.totalorder %s24_s12, 2  ;;  %p144_p2 = scmp.lt.s32.totalorder %s349_s11, 3 }
   0x5   : > { %s396_s12 = smov (%p26_p1, %s24_s12), 0  ;;  %p145_p3 = pnand %p297_p0, %p144_p2 }
   0x6   : > { %p177_p4 = scmp.lt.s32.totalorder (!%p145_p3), %s341_s9, 1 }
   0x7   : > { %148 = sbr.rel (%p145_p3) target bundleno = 18 (0x12), region = 28 }
   0xc   : > { %s398_s9 = smov (!%p177_p4, %s341_s9), 1  ;;  %vm199_vm0 = vcmask 124928   ;;  %vm202_vm1 = vcmask 125952  }
   0xd   : > { %s298_s13 = sshll.u32 %s398_s9, 2  ;;  %s300_s14 = sshll.u32 %s398_s9, 3 }
   0xe   : > { %s183_s17 = scalar_lea.vmem %s390_s0, %s298_s13  ;;  %s197_s20 = scalar_lea.vmem %s392_s2, %s300_s14 }
   0xf   : > { %v198_v0 = vld [vmem:[%s183_s17] sm:$0x7]  ;;  %s190_s23 = scalar_lea.vmem %s391_s1, %s298_s13 }
  0x10   : > { %200 = vst.msk [vmem:[%s197_s20] sm:$0x7] %vm199_vm0, %v198_v0  ;;  %v201_v1 = vld [vmem:[%s190_s23] sm:$0xf] }
  0x11   : > { %203 = vst.msk [vmem:[%s197_s20 + $0x3] sm:$0xf] %vm202_vm1, %v201_v1 }
  0x12 PF: > { %s12_s11 = sadd.s32 1, %s349_s11   ;;  %s393_s9 = smov %s345_s10 }
  0x13   : > { %p9_p5 = scmp.ge.s32.totalorder %s12_s11, 4   ;;  %s394_s10 = smov %s396_s12 }
  0x15   :  { %11 = sbr.rel (!%p9_p5) target bundleno = 2 (0x2), region = 61 }

</bundles_post_ra>
